<compile_context>
chip_gen: v5e
topology: v5e:2x2
jax: 0.10.0
libtpu: 0.0.40
codegen_flags: <defaults>
</compile_context>

<pallas_src>
import jax
import jax.numpy as jnp
from jax.experimental import pallas as pl
from jax.experimental.pallas import tpu as pltpu


def _round_up(x, m):
    return ((x + m - 1) // m) * m


def _vmem_limit_bytes():
    """Generation-aware scoped-VMEM limit: ~half the per-core VMEM (64 MiB on the
    128 MiB v5e/v6e parts, 32 MiB on v7x), with a conservative fallback when not
    tracing on a TPU backend (e.g. interpret mode)."""
    try:
        if pltpu.is_tpu_device():
            cap = pltpu.get_tpu_info().vmem_capacity_bytes
            return int(max(32 * 1024 * 1024, min(cap // 2, 64 * 1024 * 1024)))
    except Exception:
        pass
    return 32 * 1024 * 1024


def _disc_kernel(sa_ref, e_ref, drop_ref, emb_ref, wa_ref, ba_ref, we_ref,
                 be_ref, wc_ref, bc_ref, out_ref):
    """One batch tile of the AEdiscriminator forward pass.

    sa_ref  : (1, 1, tb)      int32  sampled answer token per row (lane-dense)
    e_ref   : (tb, e_dim)     bf16   embedding to discriminate
    drop_ref: (tb, ed)|(1,ed) bf16   dropout scale mask (1/(1-p) or 0; ones in eval)
    emb_ref : (ntoken, ed)    bf16   answer-embedding table (VMEM resident)
    wa_ref  : (ed, mm)        bf16   a_proj weight     ba_ref: (1, mm) f32 bias
    we_ref  : (e_dim, mm)     bf16   e_proj weight     be_ref: (1, mm) f32 bias
    wc_ref  : (1, mm)         f32    classifier weight (lane-dense)
    bc_ref  : (1, 1)          f32    classifier bias (SMEM)
    out_ref : (1, 1, tb)      f32    sigmoid probabilities (lane-dense)
    """
    ntoken = emb_ref.shape[0]
    tb = e_ref.shape[0]

    # --- ea = emb(sa): transposed one-hot (sublane iota == lane-dense sa) @ table ---
    # onehot_t[t, r] = (t == sa[r]); contracting dim 0 of both operands gives
    # ea[r, d] = emb[sa[r], d] with no dynamic gather and no relayout of sa.
    sa = sa_ref[0]                                                  # (1, tb) int32
    tok = jax.lax.broadcasted_iota(jnp.int32, (ntoken, tb), 0)      # sublane iota
    onehot_t = (tok == sa).astype(jnp.bfloat16)                     # (ntoken, tb)
    ea = jax.lax.dot_general(onehot_t, emb_ref[...],
                             (((0,), (0,)), ((), ())),
                             preferred_element_type=jnp.float32)    # (tb, ed) f32

    # --- dropout: precomputed scale mask (already carries 1/(1-p)) ------------------
    ea = ea * drop_ref[...].astype(jnp.float32)

    # --- two projections + tanh (bf16 MXU operands, f32 accumulation) ---------------
    ha = jnp.tanh(jnp.dot(ea.astype(jnp.bfloat16), wa_ref[...],
                          preferred_element_type=jnp.float32) + ba_ref[...])
    he = jnp.tanh(jnp.dot(e_ref[...], we_ref[...],
                          preferred_element_type=jnp.float32) + be_ref[...])
    ae = ha * he                                                    # (tb, mm) f32

    # --- N=1 classifier: contract mm so the logits land lane-dense (1, tb) ----------
    logit = jax.lax.dot_general(wc_ref[...], ae,
                                (((1,), (1,)), ((), ())),
                                preferred_element_type=jnp.float32) + bc_ref[0, 0]
    out_ref[...] = jax.nn.sigmoid(logit).reshape(out_ref.shape)


def init_params(key, ntoken, embed_dim, e_dim, mm_dim):
    ks = jax.random.split(key, 7)
    emb = jax.random.normal(ks[0], (ntoken, embed_dim), jnp.float32) * 0.1
    wa = jax.random.normal(ks[1], (embed_dim, mm_dim), jnp.float32) / jnp.sqrt(
        jnp.float32(embed_dim))
    ba = jax.random.normal(ks[2], (1, mm_dim), jnp.float32) * 0.01
    we = jax.random.normal(ks[3], (e_dim, mm_dim), jnp.float32) / jnp.sqrt(
        jnp.float32(e_dim))
    be = jax.random.normal(ks[4], (1, mm_dim), jnp.float32) * 0.01
    wc = jax.random.normal(ks[5], (1, mm_dim), jnp.float32) / jnp.sqrt(
        jnp.float32(mm_dim))
    bc = jax.random.normal(ks[6], (1, 1), jnp.float32) * 0.01
    return dict(emb=emb, a_proj=(wa, ba), e_proj=(we, be), classifier=(wc, bc))


def ae_discriminator_forward(a, e, params, *, key, dropout_p, training=True,
                             tile_b=None):
    """Mirrors AEdiscriminator.forward(a, e) -> (B, 1) sigmoid probabilities."""
    emb_w = params["emb"]            # (ntoken, embed_dim) f32
    wa, ba = params["a_proj"]        # (embed_dim, mm_dim), (1, mm_dim)
    we, be = params["e_proj"]        # (e_dim, mm_dim),     (1, mm_dim)
    wc, bc = params["classifier"]    # (1, mm_dim),         (1, 1)

    B = a.shape[0]
    ntoken, embed_dim = emb_w.shape
    e_dim = e.shape[1]
    mm_dim = wa.shape[1]
    wc = wc.reshape(1, mm_dim)
    bc = bc.reshape(1, 1)

    k_samp, k_drop = jax.random.split(key)

    # pa = a.clone(); pa[:, 0] += (pa.sum(1) == 0)
    zero_row = (jnp.sum(a, axis=1) == 0).astype(a.dtype)
    pa = a.at[:, 0].add(zero_row)

    # sa = torch.multinomial(pa, 1).squeeze()
    # TODO(synk): distributionally equivalent jax.random.categorical; not bit-identical
    # to the torch RNG stream (same for the dropout mask below).
    sa = jax.random.categorical(
        k_samp, jnp.log(jnp.maximum(pa, 0.0)), axis=1).astype(jnp.int32)      # (B,)

    # --- batch tiling: 16-aligned (bf16 sublane packing) row tiles, capped at 512 rows
    #     and sized so the grid has >= 2 tiles whenever B > 16 (v7x megacore split).
    if tile_b is None:
        if B > 16:
            tile_b = min(512, _round_up(pl.cdiv(B, 2), 16))
        else:
            tile_b = _round_up(max(B, 1), 16)
    tile_b = _round_up(tile_b, 16)
    Bp = _round_up(B, tile_b)
    pad = Bp - B
    n_tiles = Bp // tile_b

    # Lane-dense sa and lane-dense output (block == last two array dims -> unmasked vst).
    sa3 = jnp.pad(sa, (0, pad)).reshape(n_tiles, 1, tile_b)               # int32
    e_p = jnp.pad(e.astype(jnp.bfloat16), ((0, pad), (0, 0)))             # (Bp, e_dim)

    # --- dropout scale mask (host-precomputed; 1/(1-p) folded into the kept entries) ---
    apply_dropout = bool(training) and float(dropout_p) > 0.0
    if apply_dropout:
        p = float(dropout_p)
        keep_prob = max(1.0 - p, 0.0)
        inv_keep = (1.0 / keep_prob) if keep_prob > 0.0 else 0.0
        keep = jax.random.bernoulli(k_drop, keep_prob, (Bp, embed_dim))
        drop = (keep.astype(jnp.float32) * inv_keep).astype(jnp.bfloat16)
        drop_spec = pl.BlockSpec((tile_b, embed_dim), lambda i: (i, 0))
    else:
        drop = jnp.ones((1, embed_dim), jnp.bfloat16)                     # broadcasts
        drop_spec = pl.BlockSpec((1, embed_dim), lambda i: (0, 0))

    grid = (n_tiles,)
    sm = pltpu.MemorySpace.SMEM

    in_specs = [
        pl.BlockSpec((1, 1, tile_b), lambda i: (i, 0, 0)),       # sa (lane-dense)
        pl.BlockSpec((tile_b, e_dim), lambda i: (i, 0)),         # e  (per batch tile)
        drop_spec,                                               # dropout scale mask
        pl.BlockSpec((ntoken, embed_dim), lambda i: (0, 0)),     # emb table (resident)
        pl.BlockSpec((embed_dim, mm_dim), lambda i: (0, 0)),     # wa (resident)
        pl.BlockSpec((1, mm_dim), lambda i: (0, 0)),             # ba
        pl.BlockSpec((e_dim, mm_dim), lambda i: (0, 0)),         # we
        pl.BlockSpec((1, mm_dim), lambda i: (0, 0)),             # be
        pl.BlockSpec((1, mm_dim), lambda i: (0, 0)),             # wc (lane-dense)
        pl.BlockSpec(memory_space=sm),                           # bc (SMEM scalar)
    ]
    out_specs = pl.BlockSpec((1, 1, tile_b), lambda i: (i, 0, 0))

    flops = int(2 * Bp * (ntoken * embed_dim + (embed_dim + e_dim) * mm_dim + mm_dim)
                + 2 * Bp * mm_dim)
    transcendentals = int(Bp * (2 * mm_dim + 1))
    bytes_accessed = int(sa3.size * 4 + e_p.size * 2 + drop.size * 2
                         + emb_w.size * 2 + (wa.size + we.size) * 2
                         + (ba.size + be.size + wc.size + bc.size) * 4
                         + Bp * 4)

    out = pl.pallas_call(
        _disc_kernel,
        out_shape=jax.ShapeDtypeStruct((n_tiles, 1, tile_b), jnp.float32),
        grid=grid,
        in_specs=in_specs,
        out_specs=out_specs,
        compiler_params=pltpu.CompilerParams(
            dimension_semantics=("parallel",),        # v7x: shard tiles over both TCs
            vmem_limit_bytes=_vmem_limit_bytes()),
        cost_estimate=pl.CostEstimate(flops=flops,
                                      transcendentals=transcendentals,
                                      bytes_accessed=bytes_accessed),
    )(sa3, e_p, drop, emb_w.astype(jnp.bfloat16),
      wa.astype(jnp.bfloat16), ba.astype(jnp.float32),
      we.astype(jnp.bfloat16), be.astype(jnp.float32),
      wc.astype(jnp.float32), bc.astype(jnp.float32))

    return out.reshape(Bp)[:B][:, None]


if __name__ == "__main__":
    # Small, module-consistent shapes.
    B = 8           # batch
    NTOKEN = 16     # answer vocabulary size (synthetic stand-in for the GloVe table)
    EMBED_DIM = 32  # embed_dim
    E_DIM = 16      # e_dim
    MM_DIM = 128    # mm_dim
    DROPOUT = 0.5

    root = jax.random.PRNGKey(0)
    k_params, k_a, k_e, k_fwd = jax.random.split(root, 4)

    params = init_params(k_params, NTOKEN, EMBED_DIM, E_DIM, MM_DIM)

    # Non-negative multinomial weights; one all-zero row exercises the
    # pa[:, 0] += (pa.sum(1) == 0) fix-up path.
    a = jax.random.uniform(k_a, (B, NTOKEN), jnp.float32)
    a = a.at[1].set(0.0)
    e = jax.random.normal(k_e, (B, E_DIM), jnp.float32)

    # Training-mode forward (stochastic dropout via a precomputed mask).
    out_train = ae_discriminator_forward(a, e, params, key=k_fwd,
                                         dropout_p=DROPOUT, training=True)
    out_train = jax.block_until_ready(out_train)
    assert out_train.shape == (B, 1)
    assert bool(jnp.all((out_train >= 0.0) & (out_train <= 1.0)))

    # Eval-mode forward is deterministic given the sampled indices; compare against a
    # pure-JAX reference (bf16 table / matmul operands -> loose tolerance).
    out_eval = ae_discriminator_forward(a, e, params, key=k_fwd,
                                        dropout_p=DROPOUT, training=False)
    out_eval = jax.block_until_ready(out_eval)

    k_samp, _ = jax.random.split(k_fwd)
    zero_row = (jnp.sum(a, axis=1) == 0).astype(a.dtype)
    pa = a.at[:, 0].add(zero_row)
    sa = jax.random.categorical(k_samp, jnp.log(jnp.maximum(pa, 0.0)), axis=1)
    wa, ba = params["a_proj"]
    we, be = params["e_proj"]
    wc, bc = params["classifier"]
    ea_ref = jnp.take(params["emb"], sa, axis=0)
    ref = jax.nn.sigmoid(
        jnp.sum(jnp.tanh(ea_ref @ wa + ba) * jnp.tanh(e @ we + be) * wc,
                axis=-1, keepdims=True) + bc[0, 0])
    assert out_eval.shape == ref.shape
    assert float(jnp.max(jnp.abs(out_eval - ref))) < 5e-2

    print("KERNEL_OK")
</pallas_src>

<mosaic_0001>
module attributes {stable_mosaic.version = 11 : i64} {
  func.func @_disc_kernel(%arg0: i32, %arg1: memref<1x1x16xi32, #tpu.memory_space<vmem>>, %arg2: memref<16x16xbf16, #tpu.memory_space<vmem>>, %arg3: memref<16x32xbf16, #tpu.memory_space<vmem>>, %arg4: memref<16x32xbf16, #tpu.memory_space<vmem>>, %arg5: memref<32x128xbf16, #tpu.memory_space<vmem>>, %arg6: memref<1x128xf32, #tpu.memory_space<vmem>>, %arg7: memref<16x128xbf16, #tpu.memory_space<vmem>>, %arg8: memref<1x128xf32, #tpu.memory_space<vmem>>, %arg9: memref<1x128xf32, #tpu.memory_space<vmem>>, %arg10: memref<1x1xf32, #tpu.memory_space<smem>>, %arg11: memref<1x1x16xf32, #tpu.memory_space<vmem>>) attributes {dimension_semantics = [#tpu.dimension_semantics<parallel>], iteration_bounds = array<i64: 1>, scalar_prefetch = 0 : i64, scratch_operands = 0 : i64, tpu.core_type = #tpu.core_type<tc>, window_params = [{transform_indices = @transform_0, window_bounds = array<i64: 1, 1, 16>}, {transform_indices = @transform_1, window_bounds = array<i64: 16, 16>}, {transform_indices = @transform_2, window_bounds = array<i64: 16, 32>}, {pipeline_mode = #tpu.pipeline_mode<synchronous>, transform_indices = @transform_3, window_bounds = array<i64: 16, 32>}, {pipeline_mode = #tpu.pipeline_mode<synchronous>, transform_indices = @transform_4, window_bounds = array<i64: 32, 128>}, {pipeline_mode = #tpu.pipeline_mode<synchronous>, transform_indices = @transform_5, window_bounds = array<i64: 1, 128>}, {pipeline_mode = #tpu.pipeline_mode<synchronous>, transform_indices = @transform_6, window_bounds = array<i64: 16, 128>}, {pipeline_mode = #tpu.pipeline_mode<synchronous>, transform_indices = @transform_7, window_bounds = array<i64: 1, 128>}, {pipeline_mode = #tpu.pipeline_mode<synchronous>, transform_indices = @transform_8, window_bounds = array<i64: 1, 128>}, {transform_indices = @transform_9, window_bounds = array<i64: 1, 1>}, {transform_indices = @transform_10, window_bounds = array<i64: 1, 1, 16>}]} {
    %c0 = arith.constant 0 : index
    %c0_0 = arith.constant 0 : index
    %c0_1 = arith.constant 0 : index
    %0 = vector.load %arg1[%c0, %c0_0, %c0_1] : memref<1x1x16xi32, #tpu.memory_space<vmem>>, vector<1x1x16xi32>
    %1 = vector.shape_cast %0 : vector<1x1x16xi32> to vector<1x16xi32>
    %2 = tpu.iota {dimensions = array<i32: 0>} : vector<16x16xi32>
    %3 = vector.broadcast %1 : vector<1x16xi32> to vector<16x16xi32>
    %4 = arith.cmpi eq, %2, %3 : vector<16x16xi32>
    %5 = arith.extui %4 : vector<16x16xi1> to vector<16x16xi32>
    %6 = arith.sitofp %5 : vector<16x16xi32> to vector<16x16xf32>
    %7 = arith.truncf %6 : vector<16x16xf32> to vector<16x16xbf16>
    %c0_2 = arith.constant 0 : index
    %c0_3 = arith.constant 0 : index
    %8 = vector.load %arg4[%c0_2, %c0_3] : memref<16x32xbf16, #tpu.memory_space<vmem>>, vector<16x32xbf16>
    %cst = arith.constant dense<0.000000e+00> : vector<16x32xf32>
    %9 = tpu.matmul %7, %8, %cst {dimension_numbers = #tpu.dot_dimension_numbers<[0], [0], [1], [1], [0, 1, 1, 1], [], []>} : vector<16x16xbf16>, vector<16x32xbf16>, vector<16x32xf32> -> vector<16x32xf32>
    %c0_4 = arith.constant 0 : index
    %c0_5 = arith.constant 0 : index
    %10 = vector.load %arg3[%c0_4, %c0_5] : memref<16x32xbf16, #tpu.memory_space<vmem>>, vector<16x32xbf16>
    %11 = arith.extf %10 : vector<16x32xbf16> to vector<16x32xf32>
    %12 = arith.mulf %9, %11 : vector<16x32xf32>
    %13 = arith.truncf %12 : vector<16x32xf32> to vector<16x32xbf16>
    %c0_6 = arith.constant 0 : index
    %c0_7 = arith.constant 0 : index
    %14 = vector.load %arg5[%c0_6, %c0_7] : memref<32x128xbf16, #tpu.memory_space<vmem>>, vector<32x128xbf16>
    %cst_8 = arith.constant dense<0.000000e+00> : vector<16x128xf32>
    %15 = tpu.matmul %13, %14, %cst_8 {dimension_numbers = #tpu.dot_dimension_numbers<[1], [0], [0], [1], [0, 0, 1, 1], [], []>} : vector<16x32xbf16>, vector<32x128xbf16>, vector<16x128xf32> -> vector<16x128xf32>
    %c0_9 = arith.constant 0 : index
    %c0_10 = arith.constant 0 : index
    %16 = vector.load %arg6[%c0_9, %c0_10] : memref<1x128xf32, #tpu.memory_space<vmem>>, vector<1x128xf32>
    %17 = vector.broadcast %16 : vector<1x128xf32> to vector<16x128xf32>
    %18 = arith.addf %15, %17 : vector<16x128xf32>
    %19 = math.tanh %18 : vector<16x128xf32>
    %c0_11 = arith.constant 0 : index
    %c0_12 = arith.constant 0 : index
    %20 = vector.load %arg2[%c0_11, %c0_12] : memref<16x16xbf16, #tpu.memory_space<vmem>>, vector<16x16xbf16>
    %c0_13 = arith.constant 0 : index
    %c0_14 = arith.constant 0 : index
    %21 = vector.load %arg7[%c0_13, %c0_14] : memref<16x128xbf16, #tpu.memory_space<vmem>>, vector<16x128xbf16>
    %cst_15 = arith.constant dense<0.000000e+00> : vector<16x128xf32>
    %22 = tpu.matmul %20, %21, %cst_15 {dimension_numbers = #tpu.dot_dimension_numbers<[1], [0], [0], [1], [0, 0, 1, 1], [], []>} : vector<16x16xbf16>, vector<16x128xbf16>, vector<16x128xf32> -> vector<16x128xf32>
    %c0_16 = arith.constant 0 : index
    %c0_17 = arith.constant 0 : index
    %23 = vector.load %arg8[%c0_16, %c0_17] : memref<1x128xf32, #tpu.memory_space<vmem>>, vector<1x128xf32>
    %24 = vector.broadcast %23 : vector<1x128xf32> to vector<16x128xf32>
    %25 = arith.addf %22, %24 : vector<16x128xf32>
    %26 = math.tanh %25 : vector<16x128xf32>
    %27 = arith.mulf %19, %26 : vector<16x128xf32>
    %c0_18 = arith.constant 0 : index
    %c0_19 = arith.constant 0 : index
    %28 = vector.load %arg9[%c0_18, %c0_19] : memref<1x128xf32, #tpu.memory_space<vmem>>, vector<1x128xf32>
    %cst_20 = arith.constant dense<0.000000e+00> : vector<1x16xf32>
    %29 = tpu.matmul %28, %27, %cst_20 {dimension_numbers = #tpu.dot_dimension_numbers<[1], [1], [0], [0], [0, 0, 1, 0], [], []>} : vector<1x128xf32>, vector<16x128xf32>, vector<1x16xf32> -> vector<1x16xf32>
    %c0_21 = arith.constant 0 : index
    %c0_22 = arith.constant 0 : index
    %30 = memref.load %arg10[%c0_21, %c0_22] : memref<1x1xf32, #tpu.memory_space<smem>>
    %31 = vector.broadcast %30 : f32 to vector<1x16xf32>
    %32 = arith.addf %29, %31 : vector<1x16xf32>
    %33 = arith.negf %32 : vector<1x16xf32>
    %34 = math.exp %33 : vector<1x16xf32>
    %cst_23 = arith.constant 1.000000e+00 : f32
    %35 = vector.broadcast %cst_23 : f32 to vector<1x16xf32>
    %36 = arith.addf %35, %34 : vector<1x16xf32>
    %37 = arith.divf %35, %36 : vector<1x16xf32>
    %38 = vector.shape_cast %37 : vector<1x16xf32> to vector<1x1x16xf32>
    %c0_24 = arith.constant 0 : index
    %c0_25 = arith.constant 0 : index
    %c0_26 = arith.constant 0 : index
    %39 = vector.load %arg11[%c0_24, %c0_25, %c0_26] : memref<1x1x16xf32, #tpu.memory_space<vmem>>, vector<1x1x16xf32>
    tpu.vector_store %arg11[%c0_24, %c0_25, %c0_26], %38 {strides = array<i32>} : memref<1x1x16xf32, #tpu.memory_space<vmem>>, vector<1x1x16xf32>,
    return
  }
  func.func @transform_0(%arg0: i32) -> (i32, i32, i32) {
    %c0_i32 = arith.constant 0 : i32
    %c0_i32_0 = arith.constant 0 : i32
    %c0_i32_1 = arith.constant 0 : i32
    return %arg0, %c0_i32, %c0_i32_0 : i32, i32, i32
  }
  func.func @transform_1(%arg0: i32) -> (i32, i32) {
    %c0_i32 = arith.constant 0 : i32
    %c0_i32_0 = arith.constant 0 : i32
    return %arg0, %c0_i32 : i32, i32
  }
  func.func @transform_2(%arg0: i32) -> (i32, i32) {
    %c0_i32 = arith.constant 0 : i32
    %c0_i32_0 = arith.constant 0 : i32
    return %arg0, %c0_i32 : i32, i32
  }
  func.func @transform_3(%arg0: i32) -> (i32, i32) {
    %c0_i32 = arith.constant 0 : i32
    %c0_i32_0 = arith.constant 0 : i32
    %c0_i32_1 = arith.constant 0 : i32
    return %c0_i32, %c0_i32_0 : i32, i32
  }
  func.func @transform_4(%arg0: i32) -> (i32, i32) {
    %c0_i32 = arith.constant 0 : i32
    %c0_i32_0 = arith.constant 0 : i32
    %c0_i32_1 = arith.constant 0 : i32
    return %c0_i32, %c0_i32_0 : i32, i32
  }
  func.func @transform_5(%arg0: i32) -> (i32, i32) {
    %c0_i32 = arith.constant 0 : i32
    %c0_i32_0 = arith.constant 0 : i32
    %c0_i32_1 = arith.constant 0 : i32
    return %c0_i32, %c0_i32_0 : i32, i32
  }
  func.func @transform_6(%arg0: i32) -> (i32, i32) {
    %c0_i32 = arith.constant 0 : i32
    %c0_i32_0 = arith.constant 0 : i32
    %c0_i32_1 = arith.constant 0 : i32
    return %c0_i32, %c0_i32_0 : i32, i32
  }
  func.func @transform_7(%arg0: i32) -> (i32, i32) {
    %c0_i32 = arith.constant 0 : i32
    %c0_i32_0 = arith.constant 0 : i32
    %c0_i32_1 = arith.constant 0 : i32
    return %c0_i32, %c0_i32_0 : i32, i32
  }
  func.func @transform_8(%arg0: i32) -> (i32, i32) {
    %c0_i32 = arith.constant 0 : i32
    %c0_i32_0 = arith.constant 0 : i32
    %c0_i32_1 = arith.constant 0 : i32
    return %c0_i32, %c0_i32_0 : i32, i32
  }
  func.func @transform_9(%arg0: i32) -> (i32, i32) {
    %c0_i32 = arith.constant 0 : i32
    %c0_i32_0 = arith.constant 0 : i32
    %c0_i32_1 = arith.constant 0 : i32
    return %c0_i32, %c0_i32_0 : i32, i32
  }
  func.func @transform_10(%arg0: i32) -> (i32, i32, i32) {
    %c0_i32 = arith.constant 0 : i32
    %c0_i32_0 = arith.constant 0 : i32
    %c0_i32_1 = arith.constant 0 : i32
    return %arg0, %c0_i32, %c0_i32_0 : i32, i32, i32
  }
}

</mosaic_0001>

<bundles_post_ra>
// kernel: tpu_custom_call.1
= control target key start
LH: loop header
LB: loop body
LE: loop exit
PB: predicated region body
PF: predicated region fallthrough
CT: control target
= control target key end

     0   :  { %16 = vsyncpa [#allocation4], 0  ;;  %s629_s0 = inlined_call_operand.vmem [shape: s32[1,1,16], index: 0, kind: input, shape index: {}]   ;;  %s630_s1 = inlined_call_operand.hbm [shape: bf16[16,16], index: 1, kind: input, shape index: {}]   ;;  %s631_s2 = inlined_call_operand.hbm [shape: bf16[16,32], index: 2, kind: input, shape index: {}]   ;;  %s632_s3 = inlined_call_operand.hbm [shape: bf16[16,32], index: 3, kind: input, shape index: {}]   ;;  %s633_s4 = inlined_call_operand.hbm [shape: bf16[32,128], index: 4, kind: input, shape index: {}]   ;;  %s634_s5 = inlined_call_operand.vmem [shape: f32[1,128], index: 5, kind: input, shape index: {}]   ;;  %s635_s6 = inlined_call_operand.hbm [shape: bf16[16,128], index: 6, kind: input, shape index: {}]   ;;  %s636_s7 = inlined_call_operand.vmem [shape: f32[1,128], index: 7, kind: input, shape index: {}]   ;;  %s637_s8 = inlined_call_operand.vmem [shape: f32[1,128], index: 8, kind: input, shape index: {}]   ;;  %s638_s9 = inlined_call_operand.<no memory space> [shape: f32[1,1], index: 9, kind: input, shape index: {}]   ;;  %s639_s10 = inlined_call_operand.hbm [shape: f32[1,1,16], index: 10, kind: output, shape index: {}]  }
   0x1   :  { %17 = vsyncpa [#allocation7], 0 }
   0x2   :  { %18 = vsyncpa [#allocation10], 0 }
   0x3   :  { %19 = vsyncpa [#allocation5], 0  ;;  %s39_s15 = sshll.u32 %s631_s2, 4  ;;  %s532_s16 = smov [#allocation6]   ;;  %s40_s15 = int_to_ptr.hbm [resolvable:$true] %s39_s15 }
   0x4   :  { %s41_s17 = sshll.u32 %s532_s16, 4  ;;  %s65_s20 = sshll.u32 %s633_s4, 4  ;;  %s42_s17 = int_to_ptr.vmem [resolvable:$true] %s41_s17  ;;  %s66_s20 = int_to_ptr.hbm [resolvable:$true] %s65_s20 }
   0x5   :  { %s533_s21 = smov 64   ;;  %s534_s22 = smov 4  }
   0x6   :  { %47 = dma.hbm_to_vmem [thread:$0]  %s40_s15, 128, %s42_s17, [#allocation7], %s533_s21, %s533_s21, %s534_s22  }
   0x7   :  { %s535_s23 = smov [#allocation9]   ;;  %s26_s27 = sshll.u32 %s630_s1, 4  ;;  %s27_s27 = int_to_ptr.hbm [resolvable:$true] %s26_s27 }
   0x8   :  { %s67_s24 = sshll.u32 %s535_s23, 4  ;;  %s52_s29 = sshll.u32 %s632_s3, 4  ;;  %s68_s24 = int_to_ptr.vmem [resolvable:$true] %s67_s24  ;;  %s53_s29 = int_to_ptr.hbm [resolvable:$true] %s52_s29 }
   0x9   :  { %73 = dma.hbm_to_vmem [thread:$0]  %s66_s20, 256, %s68_s24, [#allocation10], %s533_s21, %s533_s21, %s534_s22  }
   0xa   :  { %s536_s30 = smov [#allocation3]   ;;  %s537_s4 = smov [#allocation8]  }
   0xb   :  { %s28_s11 = sshll.u32 %s536_s30, 4  ;;  %s54_s12 = sshll.u32 %s537_s4, 4  ;;  %s29_s11 = int_to_ptr.vmem [resolvable:$true] %s28_s11  ;;  %s55_s12 = int_to_ptr.vmem [resolvable:$true] %s54_s12 }
   0xc   :  { %34 = dma.hbm_to_vmem [thread:$0]  %s27_s27, 128, %s29_s11, [#allocation4], %s533_s21, %s533_s21, %s534_s22  }
   0xd   :  { %s80_s15 = sshll.u32 %s635_s6, 4  ;;  %s538_s1 = smov [#allocation11]   ;;  %s81_s15 = int_to_ptr.hbm [resolvable:$true] %s80_s15 }
   0xe   :  { %60 = dma.hbm_to_vmem [thread:$0]  %s53_s29, 128, %s55_s12, [#allocation7], %s533_s21, %s533_s21, %s534_s22  }
   0xf   :  { %s82_s16 = sshll.u32 %s538_s1, 4  ;;  %s83_s16 = int_to_ptr.vmem [resolvable:$true] %s82_s16 }
  0x10   :  { %88 = dma.hbm_to_vmem [thread:$0]  %s81_s15, 128, %s83_s16, [#allocation10], %s533_s21, %s533_s21, %s534_s22  }
  0x11   :  { %524 = dma.done.wait [#allocation4], 128  }
  0x12   :  { %525 = vsyncadd [#allocation4], 4294967168 }
  0x13   :  { %526 = dma.done.wait [#allocation7], 256  }
  0x14   :  { %527 = vsyncadd [#allocation7], 4294967040 }
  0x15   :  { %528 = dma.done.wait [#allocation10], 384  }
  0x16   :  { %529 = vsyncadd [#allocation10], 4294966912  ;;  %v117_v0 = vlaneseq  ;;  %v365_v3 = vld [vmem:[%s629_s0] ss:$0 sm:$0xff]  ;;  %v346_v4 = vld [vmem:[#allocation8] sm:$0xff]  ;;  %v539_v5 = vmov 0.0   ;;  %v259_v39 = vstv %s638_s9 }
  0x17   :  { %163 = vmatpush.bf16.msra.mxu0 %v346_v4  ;;  %v350_v9 = vld [vmem:[#allocation11] sm:$0xff]  ;;  %v349_v10 = vld [vmem:[#allocation3] sm:$0xff]  ;;  %vm152_vm2 = vcmask 130048   ;;  %v347_v13 = vld [vmem:[#allocation9] sm:$0xff]  ;;  %vm197_vm3 = vcmask 261120   ;;  %s308_s9 = sshll.u32 %s639_s10, 4  ;;  %s309_s9 = int_to_ptr.hbm [resolvable:$true] %s308_s9 }
  0x18   :  { %v118_v1 = vshrl.u32 %v117_v0, 7  ;;  %246 = vmatpush.bf16.msra.mxu2 %v350_v9  ;;  %v348_v12 = vld [vmem:[#allocation9 + $0x8] sm:$0xff]  ;;  %v352_v15 = vld [vmem:[#allocation6] sm:$0xff]   ;;  %vm299_vm7 = vcmask 122880  }
  0x19   :  { %207 = vmatpush.bf16.msra.mxu1 %v348_v12  ;;  %v353_v16 = vunpack.c.l.bf16 %v352_v15  ;;  %v354_v17 = vunpack.c.h.bf16 %v352_v15  ;;  %v366_v24 = vld [vmem:[%s636_s7] ss:$0 sm:$0xff] }
  0x1a   :  { %v119_v2 = vadd.s32 8, %v118_v1  ;;  %vm121_vm0 = vcmp.eq.s32.totalorder %v118_v1, %v365_v3  ;;  %v367_v26 = vld [vmem:[%s634_s5] ss:$0 sm:$0xff] }
  0x1b   :  { %v320_v6 = vsel %vm121_vm0, 1.0, %v539_v5  ;;  %344 = vmatmul.msk.bf16.vlgmr.msra.gmra.mxu2 %vm152_vm2, %v349_v10  ;;  %v257_v38 = vld [vmem:[%s637_s8] sm:$0x1]  ;;  %s540_s8 = smov [#allocation12]  }
  0x1c   :  { %vm122_vm1 = vcmp.eq.s32.totalorder %v119_v2, %v365_v3  ;;  %s306_s22 = sshll.u32 %s540_s8, 4  ;;  %s307_s22 = int_to_ptr.vmem [resolvable:$true] %s306_s22 }
  0x1d   :  { %v321_v7 = vsel %vm122_vm1, 1.0, %v539_v5  ;;  %208 = vmatpush.bf16.msra.mxu1 %v347_v13 }
  0x1e   :  { %v127_v8 = vpack.c.bf16 %v321_v7, %v320_v6 }
  0x20   :  { %130 = vxpose.xlu0.c.b16.start.end [1/1] (short) (narrow) %v127_v8, 16 }
  0x9e   :  { %v248_v22 = vpop.f32.mrf.mxu2 }
  0x9f   :  { %v249_v28 = vadd.f32 %v366_v24, %v248_v22 }
  0xa6   :  { %v250_v25 = vpop.f32.mrf.mxu2 }
  0xa7   :  { %v251_v27 = vadd.f32 %v366_v24, %v250_v25 }
  0xa9   :  { %368 = vtanh.f32 %v251_v27 }
  0xaf   :  { %v369_v32 = vpop.eup %368 }
  0xcc   :  { %v138_v11 = vpop.trf.xlu0 }
  0xcd   :  { %326 = vmatmul.msk.bf16.vlgmr.msra.gmra.mxu0 %vm152_vm2, %v138_v11 }
 0x14a   :  { %v165_v14 = vpop.f32.mrf.mxu0 }
 0x14b   :  { %v174_v19 = vmul.f32 %v353_v16, %v165_v14 }
 0x152   :  { %v167_v18 = vpop.f32.mrf.mxu0 }
 0x153   :  { %v175_v20 = vmul.f32 %v354_v17, %v167_v18 }
 0x155   :  { %v176_v21 = vpack.c.bf16 %v175_v20, %v174_v19 }
 0x157   :  { %335 = vmatmul.msk.bf16.vlgmr.msra.gmra.mxu1 %vm197_vm3, %v176_v21 }
 0x1d4   :  { %v210_v23 = vpop.f32.mrf.mxu1 }
 0x1d5   :  { %v211_v30 = vadd.f32 %v367_v26, %v210_v23 }
 0x1dc   :  { %v212_v29 = vpop.f32.mrf.mxu1 }
 0x1dd   :  { %v213_v31 = vadd.f32 %v367_v26, %v212_v29 }
 0x1df   :  { %370 = vtanh.f32 %v213_v31 }
 0x1e0   :  { %372 = vtanh.f32 %v249_v28 }
 0x1e1   :  { %374 = vtanh.f32 %v211_v30 }
 0x1e5   :  { %v371_v33 = vpop.eup %370 }
 0x1e6   :  { %v373_v34 = vpop.eup %372  ;;  %v256_v35 = vmul.f32 %v371_v33, %v369_v32 }
 0x1e7   :  { %v375_v36 = vpop.eup %374 }
 0x1e8   :  { %274 = vmatpush.xpose.msra.mxu3 %v256_v35  ;;  %v255_v37 = vmul.f32 %v375_v36, %v373_v34 }
 0x1ec   :  { %275 = vmatpush.xpose.msra.mxu3 %v255_v37 }
 0x1ef   :  { %276 = vmatmul.f32.vlgmr.msra.gmra.mxu3 %v257_v38 }
 0x272   :  { %v277_v40 = vpop.f32.mrf.mxu3 }
 0x273   :  { %v278_v41 = vadd.f32 %v277_v40, %v259_v39 }
 0x275   :  { %v345_v42 = vmul.f32 -1.442695, %v278_v41 }
 0x277   :  { %376 = vpow2.f32 %v345_v42 }
 0x27d   :  { %v377_v43 = vpop.eup %376 }
 0x27e   :  { %v283_v44 = vadd.f32 1.0, %v377_v43 }
 0x280   :  { %378 = vrcp.f32 %v283_v44  ;;  %v295_v48 = vand.u32 2147483648, %v283_v44  ;;  %v293_v50 = vand.u32 2147483647, %v283_v44  ;;  %vm289_vm5 = vweird.f32 %v283_v44 }
 0x282   :  { %v296_v52 = vor.u32 1.1754944e-38, %v295_v48  ;;  %vm294_vm8 = vcmp.eq.f32.partialorder %v293_v50, 8.507059e+37 }
 0x286   :  { %v379_v45 = vpop.eup %378 }
 0x287   :  { %v285_v46 = vmul.f32 %v379_v45, %v283_v44  ;;  %vm290_vm4 = vweird.f32 %v379_v45 }
 0x288   :  { %vm291_vm6 = vmor %vm289_vm5, %vm290_vm4 }
 0x289   :  { %v286_v47 = vsub.f32 1.0, %v285_v46 }
 0x28b   :  { %v287_v49 = vmul.f32 %v379_v45, %v286_v47 }
 0x28d   :  { %v288_v51 = vadd.f32 %v379_v45, %v287_v49 }
 0x28f   :  { %v292_v53 = vsel %vm291_vm6, %v379_v45, %v288_v51 }
 0x290   :  { %v297_v54 = vsel %vm294_vm8, %v296_v52, %v292_v53 }
 0x291   :  { %300 = vst.msk [vmem:[#allocation12] sm:$0x1] %vm299_vm7, %v297_v54 }
 0x292   :  { %311 = dma.vmem_to_hbm [thread:$0]  %s307_s22, 16, %s309_s9, [#allocation5]  }
 0x293   :  { %530 = dma.done.wait [#allocation5], 16  }
 0x294   :  { %531 = vsyncadd [#allocation5], 4294967280 }
 0x295   :  { %316 = vsyncpa [#allocation4], 1 }
 0x296   :  { %317 = vsyncpa [#allocation7], 1 }
 0x297   :  { %318 = vsyncpa [#allocation10], 1 }
 0x298   :  { %319 = vsyncpa [#allocation5], 1 }

</bundles_post_ra>
